<compile_context>
chip_gen: v7x
topology: tpu7x:2x2x1
jax: 0.10.0
libtpu: 0.0.40
codegen_flags: <defaults>
</compile_context>

<pallas_src>
import functools
import math

import jax
import jax.numpy as jnp
from jax.experimental import pallas as pl
from jax.experimental.pallas import tpu as pltpu

D_MODEL = 32
D_FF = 64
NUM_HEAD = 4
EPS = 1e-5


def _layer_norm(x, gamma, beta, eps):
    # PyTorch LayerNorm: biased variance over the last dim.
    mean = jnp.mean(x, axis=-1, keepdims=True)
    var = jnp.mean((x - mean) ** 2, axis=-1, keepdims=True)
    return (x - mean) * jax.lax.rsqrt(var + eps) * gamma + beta


def encoder_block_kernel(
    x_ref,    # (B*S, D)                 activations
    w_ref,    # (max(D,F), 5D + F)       packed weight slab
    v_ref,    # (1, 9D + F)              packed bias / gamma / beta slab
    o_ref,    # (B*S, D)
    *, batch, seq, num_head, d_model, d_ff, eps):
    d, f = d_model, d_ff
    dh = d // num_head
    bs = batch * seq

    x2 = x_ref[...]                                   # (B*S, D) float32

    # --- static slices of the packed slabs (offsets are Python ints) -----
    wqkv = w_ref[0:d, 0:3 * d]                        # (D, 3D)  (scale folded into Q cols)
    wo   = w_ref[0:d, 3 * d:4 * d]                    # (D, D)
    w1   = w_ref[0:d, 4 * d:4 * d + f]                # (D, F)
    w2   = w_ref[0:f, 4 * d + f:4 * d + f + d]        # (F, D)

    bqkv = v_ref[:, 0:3 * d]                          # (1, 3D)
    bo   = v_ref[:, 3 * d:4 * d]
    g1   = v_ref[:, 4 * d:5 * d]
    be1  = v_ref[:, 5 * d:6 * d]
    b1   = v_ref[:, 6 * d:6 * d + f]
    b2   = v_ref[:, 6 * d + f:7 * d + f]
    g2   = v_ref[:, 7 * d + f:8 * d + f]
    be2  = v_ref[:, 8 * d + f:9 * d + f]

    # --- fused Q/K/V projection (one MXU push, scale pre-folded) ---------
    qkv = jnp.dot(x2, wqkv, preferred_element_type=jnp.float32) + bqkv
    q3 = qkv[:, 0:d].reshape(batch, seq, d)
    k3 = qkv[:, d:2 * d].reshape(batch, seq, d)
    v3 = qkv[:, 2 * d:3 * d].reshape(batch, seq, d)

    # --- multi-head self-attention ----------------------------------------
    ctx_heads = []
    for h in range(num_head):                         # static unroll (H = 4)
        lo = h * dh
        qh = q3[:, :, lo:lo + dh]                     # (B, S, dh)
        kh = k3[:, :, lo:lo + dh]
        vh = v3[:, :, lo:lo + dh]
        s = jnp.einsum("bqd,bkd->bqk", qh, kh,
                       preferred_element_type=jnp.float32)   # (B, S, S)
        s = s - jnp.max(s, axis=-1, keepdims=True)
        p = jnp.exp(s)
        p = p / jnp.sum(p, axis=-1, keepdims=True)    # exact normalization
        ctx_heads.append(jnp.einsum("bqk,bkd->bqd", p, vh,
                                    preferred_element_type=jnp.float32))

    # Single output-projection matmul on the concatenated head contexts
    ctx = jnp.concatenate(ctx_heads, axis=-1).reshape(bs, d)   # (B*S, D)
    attn = jnp.dot(ctx, wo, preferred_element_type=jnp.float32) + bo

    # dropout1 is identity in eval mode
    out1 = _layer_norm(x2 + attn, g1, be1, eps)

    # --- Feed-forward ------------------------------------------------------
    h1 = jnp.maximum(jnp.dot(out1, w1, preferred_element_type=jnp.float32) + b1, 0.0)
    ff = jnp.dot(h1, w2, preferred_element_type=jnp.float32) + b2

    # dropout2 is identity in eval mode
    o_ref[...] = _layer_norm(out1 + ff, g2, be2, eps)


def make_params(key, d_model=D_MODEL, d_ff=D_FF):
    ks = jax.random.split(key, 12)
    init = lambda k, shape: (0.05 * jax.random.normal(k, shape, jnp.float32))
    return {
        "wq": init(ks[0], (d_model, d_model)), "bq": init(ks[1], (1, d_model)),
        "wk": init(ks[2], (d_model, d_model)), "bk": init(ks[3], (1, d_model)),
        "wv": init(ks[4], (d_model, d_model)), "bv": init(ks[5], (1, d_model)),
        "wo": init(ks[6], (d_model, d_model)), "bo": init(ks[7], (1, d_model)),
        "g1": jnp.ones((1, d_model), jnp.float32),
        "be1": jnp.zeros((1, d_model), jnp.float32),
        "w1": init(ks[8], (d_model, d_ff)), "b1": init(ks[9], (1, d_ff)),
        "w2": init(ks[10], (d_ff, d_model)), "b2": init(ks[11], (1, d_model)),
        "g2": jnp.ones((1, d_model), jnp.float32),
        "be2": jnp.zeros((1, d_model), jnp.float32),
    }


def pack_params(params, *, num_head=NUM_HEAD):
    """One-time packing of all weights/biases into two slabs (hoisted out of
    the per-call path).  1/sqrt(d_head) is folded into the Q columns here."""
    d = params["wq"].shape[0]
    f = params["w1"].shape[1]
    dh = d // num_head
    scale = 1.0 / math.sqrt(dh)

    wqkv = jnp.concatenate([params["wq"] * scale, params["wk"], params["wv"]], axis=1)
    bqkv = jnp.concatenate([params["bq"] * scale, params["bk"], params["bv"]], axis=1)

    rows, cols = max(d, f), 5 * d + f
    w_slab = jnp.zeros((rows, cols), jnp.float32)
    w_slab = w_slab.at[0:d, 0:3 * d].set(wqkv)
    w_slab = w_slab.at[0:d, 3 * d:4 * d].set(params["wo"])
    w_slab = w_slab.at[0:d, 4 * d:4 * d + f].set(params["w1"])
    w_slab = w_slab.at[0:f, 4 * d + f:4 * d + f + d].set(params["w2"])

    v_slab = jnp.concatenate(
        [bqkv, params["bo"], params["g1"], params["be1"], params["b1"],
         params["b2"], params["g2"], params["be2"]], axis=1)      # (1, 9D + F)
    return w_slab, v_slab


def encoder_block(x, w_slab, v_slab, *, num_head=NUM_HEAD, eps=EPS):
    B, S, D = x.shape
    assert D % num_head == 0, "num_head must divide d_model"
    F = w_slab.shape[1] - 5 * D
    BS = B * S
    x2 = x.reshape(BS, D)                              # free host-side reshape

    kernel = functools.partial(
        encoder_block_kernel, batch=B, seq=S, num_head=num_head,
        d_model=D, d_ff=F, eps=eps)

    out2 = pl.pallas_call(
        kernel,
        out_shape=jax.ShapeDtypeStruct((BS, D), jnp.float32),
        # No grid: single invocation, whole-array VMEM blocks (no pipeline
        # prologue/epilogue, no double buffers for a grid that never advances).
        in_specs=[pl.BlockSpec(memory_space=pltpu.MemorySpace.VMEM)] * 3,
        out_specs=pl.BlockSpec(memory_space=pltpu.MemorySpace.VMEM),
    )(x2, w_slab, v_slab)
    return out2.reshape(B, S, D)


def encoder_block_ref(x, params, *, num_head=NUM_HEAD, eps=EPS):
    """Pure-JAX reference for sanity checking (uses the unpacked params)."""
    B, S, D = x.shape
    dh = D // num_head

    def ln(v, g, b):
        m = jnp.mean(v, axis=-1, keepdims=True)
        var = jnp.mean((v - m) ** 2, axis=-1, keepdims=True)
        return (v - m) * jax.lax.rsqrt(var + eps) * g + b

    q = x @ params["wq"] + params["bq"]
    k = x @ params["wk"] + params["bk"]
    v = x @ params["wv"] + params["bv"]
    q = q.reshape(B, S, num_head, dh).transpose(0, 2, 1, 3)
    k = k.reshape(B, S, num_head, dh).transpose(0, 2, 1, 3)
    v = v.reshape(B, S, num_head, dh).transpose(0, 2, 1, 3)
    s = jnp.einsum("bhqd,bhkd->bhqk", q, k) / jnp.sqrt(jnp.float32(dh))
    p = jax.nn.softmax(s, axis=-1)
    a = jnp.einsum("bhqk,bhkd->bhqd", p, v).transpose(0, 2, 1, 3).reshape(B, S, D)
    a = a @ params["wo"] + params["bo"]
    out = ln(x + a, params["g1"], params["be1"])
    ff = jnp.maximum(out @ params["w1"] + params["b1"], 0.0) @ params["w2"] + params["b2"]
    return ln(out + ff, params["g2"], params["be2"])


if __name__ == "__main__":
    key = jax.random.PRNGKey(0)
    k_x, k_p = jax.random.split(key)

    B, S, D = 2, 8, D_MODEL
    x = jax.random.normal(k_x, (B, S, D), jnp.float32)
    params = make_params(k_p)

    # One-time packing (would be cached alongside the params in real use).
    w_slab, v_slab = pack_params(params)

    out = jax.block_until_ready(encoder_block(x, w_slab, v_slab))
    ref = encoder_block_ref(x, params)

    assert out.shape == (B, S, D)
    # exact softmax + all-f32 math: tight tolerance vs. the pure-JAX reference
    assert jnp.allclose(out, ref, atol=1e-4, rtol=1e-4), \
        f"max abs err {jnp.max(jnp.abs(out - ref))}"

    print("KERNEL_OK")
</pallas_src>

<mosaic_0001>
module attributes {stable_mosaic.version = 11 : i64} {
  func.func @encoder_block_kernel(%arg0: memref<16x32xf32, #tpu.memory_space<vmem>>, %arg1: memref<64x224xf32, #tpu.memory_space<vmem>>, %arg2: memref<1x352xf32, #tpu.memory_space<vmem>>, %arg3: memref<16x32xf32, #tpu.memory_space<vmem>>) attributes {dimension_semantics = [], scalar_prefetch = 0 : i64, scratch_operands = 0 : i64, tpu.core_type = #tpu.core_type<tc>} {
    %c0 = arith.constant 0 : index
    %c0_0 = arith.constant 0 : index
    %0 = vector.load %arg0[%c0, %c0_0] : memref<16x32xf32, #tpu.memory_space<vmem>>, vector<16x32xf32>
    %c0_1 = arith.constant 0 : index
    %c0_2 = arith.constant 0 : index
    %1 = vector.load %arg1[%c0_1, %c0_2] : memref<64x224xf32, #tpu.memory_space<vmem>>, vector<32x96xf32>
    %c0_3 = arith.constant 0 : index
    %c96 = arith.constant 96 : index
    %2 = vector.load %arg1[%c0_3, %c96] : memref<64x224xf32, #tpu.memory_space<vmem>>, vector<32x32xf32>
    %c0_4 = arith.constant 0 : index
    %c128 = arith.constant 128 : index
    %3 = vector.load %arg1[%c0_4, %c128] : memref<64x224xf32, #tpu.memory_space<vmem>>, vector<32x64xf32>
    %c0_5 = arith.constant 0 : index
    %c192 = arith.constant 192 : index
    %4 = vector.load %arg1[%c0_5, %c192] : memref<64x224xf32, #tpu.memory_space<vmem>>, vector<64x32xf32>
    %c0_6 = arith.constant 0 : index
    %c0_7 = arith.constant 0 : index
    %5 = vector.load %arg2[%c0_6, %c0_7] : memref<1x352xf32, #tpu.memory_space<vmem>>, vector<1x96xf32>
    %c0_8 = arith.constant 0 : index
    %c96_9 = arith.constant 96 : index
    %6 = vector.load %arg2[%c0_8, %c96_9] : memref<1x352xf32, #tpu.memory_space<vmem>>, vector<1x32xf32>
    %c0_10 = arith.constant 0 : index
    %c128_11 = arith.constant 128 : index
    %7 = vector.load %arg2[%c0_10, %c128_11] : memref<1x352xf32, #tpu.memory_space<vmem>>, vector<1x32xf32>
    %c0_12 = arith.constant 0 : index
    %c160 = arith.constant 160 : index
    %8 = vector.load %arg2[%c0_12, %c160] : memref<1x352xf32, #tpu.memory_space<vmem>>, vector<1x32xf32>
    %c0_13 = arith.constant 0 : index
    %c192_14 = arith.constant 192 : index
    %9 = vector.load %arg2[%c0_13, %c192_14] : memref<1x352xf32, #tpu.memory_space<vmem>>, vector<1x64xf32>
    %c0_15 = arith.constant 0 : index
    %c256 = arith.constant 256 : index
    %10 = vector.load %arg2[%c0_15, %c256] : memref<1x352xf32, #tpu.memory_space<vmem>>, vector<1x32xf32>
    %c0_16 = arith.constant 0 : index
    %c288 = arith.constant 288 : index
    %11 = vector.load %arg2[%c0_16, %c288] : memref<1x352xf32, #tpu.memory_space<vmem>>, vector<1x32xf32>
    %c0_17 = arith.constant 0 : index
    %c320 = arith.constant 320 : index
    %12 = vector.load %arg2[%c0_17, %c320] : memref<1x352xf32, #tpu.memory_space<vmem>>, vector<1x32xf32>
    %cst = arith.constant dense<0.000000e+00> : vector<16x96xf32>
    %13 = tpu.matmul %0, %1, %cst {dimension_numbers = #tpu.dot_dimension_numbers<[1], [0], [0], [1], [0, 0, 1, 1], [], []>} : vector<16x32xf32>, vector<32x96xf32>, vector<16x96xf32> -> vector<16x96xf32>
    %14 = vector.broadcast %5 : vector<1x96xf32> to vector<16x96xf32>
    %15 = arith.addf %13, %14 : vector<16x96xf32>
    %16 = vector.extract_strided_slice %15 {offsets = [0, 0], sizes = [16, 32], strides = [1, 1]} : vector<16x96xf32> to vector<16x32xf32>
    %17 = vector.shape_cast %16 : vector<16x32xf32> to vector<2x8x32xf32>
    %18 = vector.extract_strided_slice %15 {offsets = [0, 32], sizes = [16, 32], strides = [1, 1]} : vector<16x96xf32> to vector<16x32xf32>
    %19 = vector.shape_cast %18 : vector<16x32xf32> to vector<2x8x32xf32>
    %20 = vector.extract_strided_slice %15 {offsets = [0, 64], sizes = [16, 32], strides = [1, 1]} : vector<16x96xf32> to vector<16x32xf32>
    %21 = vector.shape_cast %20 : vector<16x32xf32> to vector<2x8x32xf32>
    %22 = vector.extract_strided_slice %17 {offsets = [0, 0, 0], sizes = [2, 8, 8], strides = [1, 1, 1]} : vector<2x8x32xf32> to vector<2x8x8xf32>
    %23 = vector.extract_strided_slice %19 {offsets = [0, 0, 0], sizes = [2, 8, 8], strides = [1, 1, 1]} : vector<2x8x32xf32> to vector<2x8x8xf32>
    %24 = vector.extract_strided_slice %21 {offsets = [0, 0, 0], sizes = [2, 8, 8], strides = [1, 1, 1]} : vector<2x8x32xf32> to vector<2x8x8xf32>
    "tpu.trace_start"() <{level = 10 : i32, message = "bqd,bkd->bqk"}> : () -> ()
    %cst_18 = arith.constant dense<0.000000e+00> : vector<2x8x8xf32>
    %25 = tpu.matmul %22, %23, %cst_18 {dimension_numbers = #tpu.dot_dimension_numbers<[2], [2], [1], [1], [0, 0, 0, 1, 1, 1], [0], [0]>} : vector<2x8x8xf32>, vector<2x8x8xf32>, vector<2x8x8xf32> -> vector<2x8x8xf32>
    "tpu.trace_stop"() : () -> ()
    %cst_19 = arith.constant dense<0xFF800000> : vector<2x8xf32>
    %26 = vector.multi_reduction <maximumf>, %25, %cst_19 [2] : vector<2x8x8xf32> to vector<2x8xf32>
    %27 = vector.shape_cast %26 : vector<2x8xf32> to vector<2x8x1xf32>
    %28 = vector.broadcast %27 : vector<2x8x1xf32> to vector<2x8x8xf32>
    %29 = arith.subf %25, %28 : vector<2x8x8xf32>
    %30 = math.exp %29 : vector<2x8x8xf32>
    %cst_20 = arith.constant dense<0.000000e+00> : vector<2x8xf32>
    %31 = vector.multi_reduction <add>, %30, %cst_20 [2] : vector<2x8x8xf32> to vector<2x8xf32>
    %32 = vector.shape_cast %31 : vector<2x8xf32> to vector<2x8x1xf32>
    %33 = vector.broadcast %32 : vector<2x8x1xf32> to vector<2x8x8xf32>
    %34 = arith.divf %30, %33 : vector<2x8x8xf32>
    "tpu.trace_start"() <{level = 10 : i32, message = "bqk,bkd->bqd"}> : () -> ()
    %cst_21 = arith.constant dense<0.000000e+00> : vector<2x8x8xf32>
    %35 = tpu.matmul %34, %24, %cst_21 {dimension_numbers = #tpu.dot_dimension_numbers<[2], [1], [1], [2], [0, 0, 0, 1, 1, 2], [0], [0]>} : vector<2x8x8xf32>, vector<2x8x8xf32>, vector<2x8x8xf32> -> vector<2x8x8xf32>
    "tpu.trace_stop"() : () -> ()
    %36 = vector.extract_strided_slice %17 {offsets = [0, 0, 8], sizes = [2, 8, 8], strides = [1, 1, 1]} : vector<2x8x32xf32> to vector<2x8x8xf32>
    %37 = vector.extract_strided_slice %19 {offsets = [0, 0, 8], sizes = [2, 8, 8], strides = [1, 1, 1]} : vector<2x8x32xf32> to vector<2x8x8xf32>
    %38 = vector.extract_strided_slice %21 {offsets = [0, 0, 8], sizes = [2, 8, 8], strides = [1, 1, 1]} : vector<2x8x32xf32> to vector<2x8x8xf32>
    "tpu.trace_start"() <{level = 10 : i32, message = "bqd,bkd->bqk"}> : () -> ()
    %cst_22 = arith.constant dense<0.000000e+00> : vector<2x8x8xf32>
    %39 = tpu.matmul %36, %37, %cst_22 {dimension_numbers = #tpu.dot_dimension_numbers<[2], [2], [1], [1], [0, 0, 0, 1, 1, 1], [0], [0]>} : vector<2x8x8xf32>, vector<2x8x8xf32>, vector<2x8x8xf32> -> vector<2x8x8xf32>
    "tpu.trace_stop"() : () -> ()
    %cst_23 = arith.constant dense<0xFF800000> : vector<2x8xf32>
    %40 = vector.multi_reduction <maximumf>, %39, %cst_23 [2] : vector<2x8x8xf32> to vector<2x8xf32>
    %41 = vector.shape_cast %40 : vector<2x8xf32> to vector<2x8x1xf32>
    %42 = vector.broadcast %41 : vector<2x8x1xf32> to vector<2x8x8xf32>
    %43 = arith.subf %39, %42 : vector<2x8x8xf32>
    %44 = math.exp %43 : vector<2x8x8xf32>
    %cst_24 = arith.constant dense<0.000000e+00> : vector<2x8xf32>
    %45 = vector.multi_reduction <add>, %44, %cst_24 [2] : vector<2x8x8xf32> to vector<2x8xf32>
    %46 = vector.shape_cast %45 : vector<2x8xf32> to vector<2x8x1xf32>
    %47 = vector.broadcast %46 : vector<2x8x1xf32> to vector<2x8x8xf32>
    %48 = arith.divf %44, %47 : vector<2x8x8xf32>
    "tpu.trace_start"() <{level = 10 : i32, message = "bqk,bkd->bqd"}> : () -> ()
    %cst_25 = arith.constant dense<0.000000e+00> : vector<2x8x8xf32>
    %49 = tpu.matmul %48, %38, %cst_25 {dimension_numbers = #tpu.dot_dimension_numbers<[2], [1], [1], [2], [0, 0, 0, 1, 1, 2], [0], [0]>} : vector<2x8x8xf32>, vector<2x8x8xf32>, vector<2x8x8xf32> -> vector<2x8x8xf32>
    "tpu.trace_stop"() : () -> ()
    %50 = vector.extract_strided_slice %17 {offsets = [0, 0, 16], sizes = [2, 8, 8], strides = [1, 1, 1]} : vector<2x8x32xf32> to vector<2x8x8xf32>
    %51 = vector.extract_strided_slice %19 {offsets = [0, 0, 16], sizes = [2, 8, 8], strides = [1, 1, 1]} : vector<2x8x32xf32> to vector<2x8x8xf32>
    %52 = vector.extract_strided_slice %21 {offsets = [0, 0, 16], sizes = [2, 8, 8], strides = [1, 1, 1]} : vector<2x8x32xf32> to vector<2x8x8xf32>
    "tpu.trace_start"() <{level = 10 : i32, message = "bqd,bkd->bqk"}> : () -> ()
    %cst_26 = arith.constant dense<0.000000e+00> : vector<2x8x8xf32>
    %53 = tpu.matmul %50, %51, %cst_26 {dimension_numbers = #tpu.dot_dimension_numbers<[2], [2], [1], [1], [0, 0, 0, 1, 1, 1], [0], [0]>} : vector<2x8x8xf32>, vector<2x8x8xf32>, vector<2x8x8xf32> -> vector<2x8x8xf32>
    "tpu.trace_stop"() : () -> ()
    %cst_27 = arith.constant dense<0xFF800000> : vector<2x8xf32>
    %54 = vector.multi_reduction <maximumf>, %53, %cst_27 [2] : vector<2x8x8xf32> to vector<2x8xf32>
    %55 = vector.shape_cast %54 : vector<2x8xf32> to vector<2x8x1xf32>
    %56 = vector.broadcast %55 : vector<2x8x1xf32> to vector<2x8x8xf32>
    %57 = arith.subf %53, %56 : vector<2x8x8xf32>
    %58 = math.exp %57 : vector<2x8x8xf32>
    %cst_28 = arith.constant dense<0.000000e+00> : vector<2x8xf32>
    %59 = vector.multi_reduction <add>, %58, %cst_28 [2] : vector<2x8x8xf32> to vector<2x8xf32>
    %60 = vector.shape_cast %59 : vector<2x8xf32> to vector<2x8x1xf32>
    %61 = vector.broadcast %60 : vector<2x8x1xf32> to vector<2x8x8xf32>
    %62 = arith.divf %58, %61 : vector<2x8x8xf32>
    "tpu.trace_start"() <{level = 10 : i32, message = "bqk,bkd->bqd"}> : () -> ()
    %cst_29 = arith.constant dense<0.000000e+00> : vector<2x8x8xf32>
    %63 = tpu.matmul %62, %52, %cst_29 {dimension_numbers = #tpu.dot_dimension_numbers<[2], [1], [1], [2], [0, 0, 0, 1, 1, 2], [0], [0]>} : vector<2x8x8xf32>, vector<2x8x8xf32>, vector<2x8x8xf32> -> vector<2x8x8xf32>
    "tpu.trace_stop"() : () -> ()
    %64 = vector.extract_strided_slice %17 {offsets = [0, 0, 24], sizes = [2, 8, 8], strides = [1, 1, 1]} : vector<2x8x32xf32> to vector<2x8x8xf32>
    %65 = vector.extract_strided_slice %19 {offsets = [0, 0, 24], sizes = [2, 8, 8], strides = [1, 1, 1]} : vector<2x8x32xf32> to vector<2x8x8xf32>
    %66 = vector.extract_strided_slice %21 {offsets = [0, 0, 24], sizes = [2, 8, 8], strides = [1, 1, 1]} : vector<2x8x32xf32> to vector<2x8x8xf32>
    "tpu.trace_start"() <{level = 10 : i32, message = "bqd,bkd->bqk"}> : () -> ()
    %cst_30 = arith.constant dense<0.000000e+00> : vector<2x8x8xf32>
    %67 = tpu.matmul %64, %65, %cst_30 {dimension_numbers = #tpu.dot_dimension_numbers<[2], [2], [1], [1], [0, 0, 0, 1, 1, 1], [0], [0]>} : vector<2x8x8xf32>, vector<2x8x8xf32>, vector<2x8x8xf32> -> vector<2x8x8xf32>
    "tpu.trace_stop"() : () -> ()
    %cst_31 = arith.constant dense<0xFF800000> : vector<2x8xf32>
    %68 = vector.multi_reduction <maximumf>, %67, %cst_31 [2] : vector<2x8x8xf32> to vector<2x8xf32>
    %69 = vector.shape_cast %68 : vector<2x8xf32> to vector<2x8x1xf32>
    %70 = vector.broadcast %69 : vector<2x8x1xf32> to vector<2x8x8xf32>
    %71 = arith.subf %67, %70 : vector<2x8x8xf32>
    %72 = math.exp %71 : vector<2x8x8xf32>
    %cst_32 = arith.constant dense<0.000000e+00> : vector<2x8xf32>
    %73 = vector.multi_reduction <add>, %72, %cst_32 [2] : vector<2x8x8xf32> to vector<2x8xf32>
    %74 = vector.shape_cast %73 : vector<2x8xf32> to vector<2x8x1xf32>
    %75 = vector.broadcast %74 : vector<2x8x1xf32> to vector<2x8x8xf32>
    %76 = arith.divf %72, %75 : vector<2x8x8xf32>
    "tpu.trace_start"() <{level = 10 : i32, message = "bqk,bkd->bqd"}> : () -> ()
    %cst_33 = arith.constant dense<0.000000e+00> : vector<2x8x8xf32>
    %77 = tpu.matmul %76, %66, %cst_33 {dimension_numbers = #tpu.dot_dimension_numbers<[2], [1], [1], [2], [0, 0, 0, 1, 1, 2], [0], [0]>} : vector<2x8x8xf32>, vector<2x8x8xf32>, vector<2x8x8xf32> -> vector<2x8x8xf32>
    "tpu.trace_stop"() : () -> ()
    %78 = tpu.concatenate %35, %49, %63, %77 in 2 : vector<2x8x8xf32>, vector<2x8x8xf32>, vector<2x8x8xf32>, vector<2x8x8xf32> -> vector<2x8x32xf32>
    %79 = vector.shape_cast %78 : vector<2x8x32xf32> to vector<16x32xf32>
    %cst_34 = arith.constant dense<0.000000e+00> : vector<16x32xf32>
    %80 = tpu.matmul %79, %2, %cst_34 {dimension_numbers = #tpu.dot_dimension_numbers<[1], [0], [0], [1], [0, 0, 1, 1], [], []>} : vector<16x32xf32>, vector<32x32xf32>, vector<16x32xf32> -> vector<16x32xf32>
    %81 = vector.broadcast %6 : vector<1x32xf32> to vector<16x32xf32>
    %82 = arith.addf %80, %81 : vector<16x32xf32>
    %83 = arith.addf %0, %82 : vector<16x32xf32>
    %cst_35 = arith.constant dense<0.000000e+00> : vector<16xf32>
    %84 = vector.multi_reduction <add>, %83, %cst_35 [1] : vector<16x32xf32> to vector<16xf32>
    %85 = vector.shape_cast %84 : vector<16xf32> to vector<16x1xf32>
    %cst_36 = arith.constant 3.200000e+01 : f32
    %86 = vector.broadcast %cst_36 : f32 to vector<16x1xf32>
    %87 = arith.divf %85, %86 : vector<16x1xf32>
    %88 = vector.broadcast %87 : vector<16x1xf32> to vector<16x32xf32>
    %89 = arith.subf %83, %88 : vector<16x32xf32>
    %90 = arith.mulf %89, %89 : vector<16x32xf32>
    %cst_37 = arith.constant dense<0.000000e+00> : vector<16xf32>
    %91 = vector.multi_reduction <add>, %90, %cst_37 [1] : vector<16x32xf32> to vector<16xf32>
    %92 = vector.shape_cast %91 : vector<16xf32> to vector<16x1xf32>
    %cst_38 = arith.constant 3.200000e+01 : f32
    %93 = vector.broadcast %cst_38 : f32 to vector<16x1xf32>
    %94 = arith.divf %92, %93 : vector<16x1xf32>
    %95 = vector.broadcast %87 : vector<16x1xf32> to vector<16x32xf32>
    %96 = arith.subf %83, %95 : vector<16x32xf32>
    %cst_39 = arith.constant 9.99999974E-6 : f32
    %97 = vector.broadcast %cst_39 : f32 to vector<16x1xf32>
    %98 = arith.addf %94, %97 : vector<16x1xf32>
    %99 = math.rsqrt %98 : vector<16x1xf32>
    %100 = vector.broadcast %99 : vector<16x1xf32> to vector<16x32xf32>
    %101 = arith.mulf %96, %100 : vector<16x32xf32>
    %102 = vector.broadcast %7 : vector<1x32xf32> to vector<16x32xf32>
    %103 = arith.mulf %101, %102 : vector<16x32xf32>
    %104 = vector.broadcast %8 : vector<1x32xf32> to vector<16x32xf32>
    %105 = arith.addf %103, %104 : vector<16x32xf32>
    %cst_40 = arith.constant dense<0.000000e+00> : vector<16x64xf32>
    %106 = tpu.matmul %105, %3, %cst_40 {dimension_numbers = #tpu.dot_dimension_numbers<[1], [0], [0], [1], [0, 0, 1, 1], [], []>} : vector<16x32xf32>, vector<32x64xf32>, vector<16x64xf32> -> vector<16x64xf32>
    %107 = vector.broadcast %9 : vector<1x64xf32> to vector<16x64xf32>
    %108 = arith.addf %106, %107 : vector<16x64xf32>
    %cst_41 = arith.constant 0.000000e+00 : f32
    %109 = vector.broadcast %cst_41 : f32 to vector<16x64xf32>
    %110 = arith.maximumf %108, %109 : vector<16x64xf32>
    %cst_42 = arith.constant dense<0.000000e+00> : vector<16x32xf32>
    %111 = tpu.matmul %110, %4, %cst_42 {dimension_numbers = #tpu.dot_dimension_numbers<[1], [0], [0], [1], [0, 0, 1, 1], [], []>} : vector<16x64xf32>, vector<64x32xf32>, vector<16x32xf32> -> vector<16x32xf32>
    %112 = vector.broadcast %10 : vector<1x32xf32> to vector<16x32xf32>
    %113 = arith.addf %111, %112 : vector<16x32xf32>
    %114 = arith.addf %105, %113 : vector<16x32xf32>
    %cst_43 = arith.constant dense<0.000000e+00> : vector<16xf32>
    %115 = vector.multi_reduction <add>, %114, %cst_43 [1] : vector<16x32xf32> to vector<16xf32>
    %116 = vector.shape_cast %115 : vector<16xf32> to vector<16x1xf32>
    %cst_44 = arith.constant 3.200000e+01 : f32
    %117 = vector.broadcast %cst_44 : f32 to vector<16x1xf32>
    %118 = arith.divf %116, %117 : vector<16x1xf32>
    %119 = vector.broadcast %118 : vector<16x1xf32> to vector<16x32xf32>
    %120 = arith.subf %114, %119 : vector<16x32xf32>
    %121 = arith.mulf %120, %120 : vector<16x32xf32>
    %cst_45 = arith.constant dense<0.000000e+00> : vector<16xf32>
    %122 = vector.multi_reduction <add>, %121, %cst_45 [1] : vector<16x32xf32> to vector<16xf32>
    %123 = vector.shape_cast %122 : vector<16xf32> to vector<16x1xf32>
    %cst_46 = arith.constant 3.200000e+01 : f32
    %124 = vector.broadcast %cst_46 : f32 to vector<16x1xf32>
    %125 = arith.divf %123, %124 : vector<16x1xf32>
    %126 = vector.broadcast %118 : vector<16x1xf32> to vector<16x32xf32>
    %127 = arith.subf %114, %126 : vector<16x32xf32>
    %cst_47 = arith.constant 9.99999974E-6 : f32
    %128 = vector.broadcast %cst_47 : f32 to vector<16x1xf32>
    %129 = arith.addf %125, %128 : vector<16x1xf32>
    %130 = math.rsqrt %129 : vector<16x1xf32>
    %131 = vector.broadcast %130 : vector<16x1xf32> to vector<16x32xf32>
    %132 = arith.mulf %127, %131 : vector<16x32xf32>
    %133 = vector.broadcast %11 : vector<1x32xf32> to vector<16x32xf32>
    %134 = arith.mulf %132, %133 : vector<16x32xf32>
    %135 = vector.broadcast %12 : vector<1x32xf32> to vector<16x32xf32>
    %136 = arith.addf %134, %135 : vector<16x32xf32>
    %c0_48 = arith.constant 0 : index
    %c0_49 = arith.constant 0 : index
    %137 = vector.load %arg3[%c0_48, %c0_49] : memref<16x32xf32, #tpu.memory_space<vmem>>, vector<16x32xf32>
    tpu.vector_store %arg3[%c0_48, %c0_49], %136 {strides = array<i32>} : memref<16x32xf32, #tpu.memory_space<vmem>>, vector<16x32xf32>,
    return
  }
}

</mosaic_0001>

<bundles_post_ra>
// kernel: tpu_custom_call.1
= control target key start
LH: loop header
LB: loop body
LE: loop exit
PB: predicated region body
PF: predicated region fallthrough
CT: control target
= control target key end

     0   :  { %8 = vsyncpa [#allocation3], 0  ;;  %s2627_s0 = inlined_call_operand.hbm [shape: f32[16,32], index: 0, kind: input, shape index: {}]   ;;  %s2628_s1 = inlined_call_operand.hbm [shape: f32[64,224], index: 1, kind: input, shape index: {}]   ;;  %s2629_s2 = inlined_call_operand.vmem [shape: f32[1,352], index: 2, kind: input, shape index: {}]   ;;  %s2630_s3 = inlined_call_operand.hbm [shape: f32[16,32], index: 3, kind: output, shape index: {}]  }
   0x1   :  { %9 = vsyncpa [#allocation6], 0 }
   0x2   :  { %10 = vsyncpa [#allocation4], 0  ;;  %s2336_s12 = smov [#allocation2]   ;;  %s2264_s16 = scalar_lea.hbm %s2627_s0, 256 }
   0x3   :  { %s16_s13 = sshll.u32 %s2336_s12, 4  ;;  %p2265_p0 = scmp.ne.s32.totalorder %s2627_s0, %s2264_s16  ;;  %s17_s13 = int_to_ptr.vmem [resolvable:$true] %s16_s13 }
   0x4   :  { %p2268_p1 = scmp.lt.u32.totalorder %s2264_s16, %s2627_s0 }
   0x6   :  { %p2270_p2 = pnand %p2268_p1, %p2265_p0 }
   0x8   :  { %2273 = shalt.err (!%p2270_p2)
}
   0x9   :  { %s2274_s21 = scalar_lea.vmem %s17_s13, 256  ;;  %p2279_p4 = scmp.lt.s32.totalorder %s17_s13, %s17_s13 }
   0xa   :  { %p2275_p3 = scmp.ne.s32.totalorder %s17_s13, %s2274_s21  ;;  %p2280_p5 = scmp.lt.s32.totalorder %s2274_s21, %s2274_s21 }
   0xc   :  { %p2281_p6 = por %p2280_p5, %p2279_p4 }
   0xe   :  { %p2282_p7 = pnand %p2281_p6, %p2275_p3 }
  0x10   :  { %2285 = shalt.err (!%p2282_p7)
}
  0x11   :  { %s2337_s22 = smov 128   ;;  %s2338_s23 = smov 8  }
  0x12   :  { %22 = dma.hbm_to_vmem [thread:$0]  %s2627_s0, 256, %s17_s13, [#allocation3], %s2337_s22, %s2337_s22, %s2338_s23  }
  0x13   :  { %s2339_s26 = smov [#allocation5]   ;;  %s2286_s30 = scalar_lea.hbm %s2628_s1, 2048 }
  0x14   :  { %s28_s27 = sshll.u32 %s2339_s26, 4  ;;  %p2287_p8 = scmp.ne.s32.totalorder %s2628_s1, %s2286_s30  ;;  %s29_s27 = int_to_ptr.vmem [resolvable:$true] %s28_s27 }
  0x15   :  { %p2290_p9 = scmp.lt.u32.totalorder %s2286_s30, %s2628_s1 }
  0x17   :  { %p2292_p10 = pnand %p2290_p9, %p2287_p8 }
  0x19   :  { %2295 = shalt.err (!%p2292_p10)
}
  0x1a   :  { %s2296_s8 = scalar_lea.vmem %s29_s27, 2048  ;;  %p2301_p12 = scmp.lt.s32.totalorder %s29_s27, %s29_s27 }
  0x1b   :  { %p2297_p11 = scmp.ne.s32.totalorder %s29_s27, %s2296_s8  ;;  %p2302_p13 = scmp.lt.s32.totalorder %s2296_s8, %s2296_s8 }
  0x1d   :  { %p2303_p0 = por %p2302_p13, %p2301_p12 }
  0x1f   :  { %p2304_p1 = pnand %p2303_p0, %p2297_p11 }
  0x21   :  { %2307 = shalt.err (!%p2304_p1)
}
  0x22   :  { %s2340_s0 = smov 256   ;;  %s2341_s9 = smov 16  }
  0x23   :  { %34 = dma.hbm_to_vmem [thread:$0]  %s2628_s1, 2048, %s29_s27, [#allocation6], %s2340_s0, %s2340_s0, %s2341_s9  }
  0x24   :  { %2330 = dma.done.wait [#allocation3], 256  }
  0x25   :  { %2331 = vsyncadd [#allocation3], 4294967040 }
  0x26   :  { %2332 = dma.done.wait [#allocation6], 2048  }
  0x27   :  { %2333 = vsyncadd [#allocation6], 4294965248  ;;  %vm66_vm0 = vcmask 261120   ;;  %v2406_v0 = vld [vmem:[#allocation5] sm:$0xff]  ;;  %v2408_v1 = vld [vmem:[#allocation5 + $0x10] sm:$0xff]  ;;  %v2342_v9 = vmov 0.0  }
  0x28   :  { %v2410_v2 = vld [vmem:[#allocation5 + $0x20] sm:$0xff]  ;;  %v2194_v3 = vpack.i.bf16 %v2408_v1, %v2406_v0  ;;  %v2132_v4 = vpack.c.bf16 %v2408_v1, %v2406_v0  ;;  %v2416_v5 = vld [vmem:[#allocation5 + $0x30] sm:$0xff]  ;;  %v2424_v8 = vld [vmem:[#allocation2 + $0x8] sm:$0xff]  ;;  %2021 = vmatprep.subr.mxu0 %v2342_v9  ;;  %vm2343_vm1 = vmmov 0   ;;  %s2344_s13 = smov 96   ;;  %vm151_vm2 = vcmask 64512  }
  0x29   :  { %v2418_v6 = vld [vmem:[#allocation2] sm:$0xff]  ;;  %v2136_v7 = vpack.c.bf16 %v2416_v5, %v2410_v2  ;;  %2023 = vmatprep.mubr.msk.f32.mxu0 %vm2343_vm1, %v2342_v9  ;;  %s2345_s14 = smov 64   ;;  %s2346_s15 = smov 88   ;;  %vm1496_vm3 = vcmask 195584   ;;  %vm1493_vm4 = vcmask 130048   ;;  %vm1765_vm5 = vcmask 523264  }
  0x2a   :  { %2008 = vmatprep.mubr.msk.f32.mxu1 %vm66_vm0, %v2418_v6  ;;  %2133 = vmatprep.subr.bf16.mxu1 %v2132_v4  ;;  %v2437_v10 = vld [vmem:[%s2629_s2] ss:$0 sm:$0xff]  ;;  %s2347_s16 = smov 120   ;;  %s2348_s17 = smov 56  }
  0x2b   :  { %2135 = vmatpush3.bf16.msra.mxu1 %v2132_v4  ;;  %s2349_s18 = smov 80   ;;  %s2350_s19 = smov 112  }
  0x2c   :  { %2137 = vmatprep.subr.bf16.mxu1 %v2136_v7  ;;  %s2351_s20 = smov 48   ;;  %s2352_s21 = smov 72  }
  0x2d   :  { %s2353_s24 = smov 104   ;;  %s2354_s25 = smov 40  }
  0x2e   :  { %s2355_s26 = smov 32   ;;  %s2356_s27 = smov 24  }
  0x2f   :  { %2139 = vmatpush3.bf16.msra.mxu1 %v2136_v7 }
  0x30   :  { %2011 = vmatprep.subr.mxu1 %v2342_v9 }
  0x32   :  { %2009 = vmatmul.mubr.msk.f32.vlgmr.msra.gmra.mrb[0].mxu1 %vm66_vm0, %v2424_v8 }
  0x33   :  { %2013 = vmatprep.mubr.msk.f32.mxu1 %vm2343_vm1, %v2342_v9 }
 0x105   :  { %v2010_v11 = vpop.f32.mrb[0].mxu1 }
 0x106   :  { %v139_v12 = vpop.f32.mrb[1].mxu1  ;;  %v2445_v14 = vadd.f32 %v2010_v11, %v2437_v10 }
 0x107   :  { %v2440_v13 = vadd.f32 %v2437_v10, %v139_v12 }
 0x109   :  { %149 = vrot.lane.b32.xlu0 %v2440_v13, %s2344_s13 }
 0x10d   :  { %227 = vrot.lane.b32.xlu0 %v2445_v14, %s2344_s13 }
 0x17b   :  { %v150_v15 = vpop.permute.xlu0 %149 }
 0x17c   :  { %2012 = vmatpush3.xpose.msk.msra.mxu1 %vm151_vm2, %v150_v15 }
 0x17d   :  { %2016 = vmatprep.subr.mxu1 %v2342_v9 }
 0x17f   :  { %2014 = vmatmul.mubr.msk.f32.vlgmr.msra.gmra.mrb[2].mxu1 %vm151_vm2, %v2440_v13  ;;  %v228_v16 = vpop.permute.xlu0 %227 }
 0x180   :  { %2017 = vmatpush3.xpose.msk.msra.mxu1 %vm151_vm2, %v228_v16  ;;  %2018 = vmatprep.mubr.msk.f32.mxu1 %vm2343_vm1, %v2342_v9 }
 0x181   :  { %2026 = vmatprep.subr.mxu1 %v2342_v9 }
 0x183   :  { %2019 = vmatmul.mubr.msk.f32.vlgmr.msra.gmra.mrb[4].mxu1 %vm151_vm2, %v2445_v14 }
 0x184   :  { %2028 = vmatprep.mubr.msk.f32.mxu1 %vm2343_vm1, %v2342_v9 }
 0x252   :  { %v222_v17 = vpop.f32.mrb[2].mxu1 }
 0x253   :  { %v2015_v18 = vpop.f32.mrb[3].mxu1  ;;  %v303_v19 = vsel %vm151_vm2, %v222_v17, -inf }
 0x254   :  { %304 = vmax.xlane.f32.xlu1 %v303_v19 }
 0x256   :  { %v299_v20 = vpop.f32.mrb[4].mxu1 }
 0x257   :  { %v2020_v21 = vpop.f32.mrb[5].mxu1  ;;  %v306_v22 = vsel %vm151_vm2, %v299_v20, -inf }
 0x258   :  { %307 = vmax.xlane.f32.xlu1 %v306_v22 }
 0x269   :  { %325 = vrot.lane.b32.xlu1 %v2440_v13, %s2345_s14 }
 0x26d   :  { %401 = vrot.lane.b32.xlu1 %v2445_v14, %s2345_s14 }
 0x271   :  { %479 = vrot.lane.b32.xlu1 %v2440_v13, %s2346_s15 }
 0x275   :  { %557 = vrot.lane.b32.xlu1 %v2445_v14, %s2346_s15 }
 0x2e1   :  { %v305_v23 = vpop.xlane.xlu1 %304 }
 0x2e2   :  { %v309_v24 = vsub.f32 %v222_v17, %v305_v23 }
 0x2e4   :  { %v311_v25 = vmul.f32 1.442695, %v309_v24 }
 0x2e5   :  { %v308_v26 = vpop.xlane.xlu1 %307 }
 0x2e6   :  { %2224 = vpow2.f32 %v311_v25  ;;  %v310_v27 = vsub.f32 %v299_v20, %v308_v26 }
 0x2e8   :  { %v313_v28 = vmul.f32 1.442695, %v310_v27 }
 0x2e9   :  { %v326_v29 = vpop.permute.xlu1 %325 }
 0x2ea   :  { %2226 = vpow2.f32 %v313_v28  ;;  %2022 = vmatpush3.msra.mxu0 %v326_v29 }
 0x2eb   :  { %2031 = vmatprep.subr.mxu0 %v2342_v9 }
 0x2ed   :  { %v402_v30 = vpop.permute.xlu1 %401 }
 0x2ee   :  { %2027 = vmatpush3.msra.mxu1 %v402_v30 }
 0x2ef   :  { %2036 = vmatprep.subr.mxu1 %v2342_v9 }
 0x2f0   :  { %v2225_v31 = vpop.eup %2224 }
 0x2f1   :  { %v315_v32 = vsel %vm151_vm2, %v2225_v31, 0.0  ;;  %v480_v35 = vpop.permute.xlu1 %479 }
 0x2f2   :  { %316 = vadd.xlane.f32.xlu0 %v315_v32 }
 0x2f4   :  { %v2227_v33 = vpop.eup %2226 }
 0x2f5   :  { %v318_v34 = vsel %vm151_vm2, %v2227_v33, 0.0  ;;  %v558_v36 = vpop.permute.xlu1 %557 }
 0x2f6   :  { %319 = vadd.xlane.f32.xlu1 %v318_v34 }
 0x307   :  { %555 = vrot.lane.b32.xlu1 %v2445_v14, %s2347_s16 }
 0x308   :  { %477 = vrot.lane.b32.xlu0 %v2440_v13, %s2347_s16 }
 0x37f   :  { %v317_v37 = vpop.xlane.xlu0 %316 }
 0x380   :  { %2228 = vrcp.f32 %v317_v37 }
 0x383   :  { %v320_v38 = vpop.xlane.xlu1 %319  ;;  %v478_v43 = vpop.permute.xlu0 %477 }
 0x384   :  { %2230 = vrcp.f32 %v320_v38 }
 0x387   :  { %v556_v44 = vpop.permute.xlu1 %555 }
 0x38a   :  { %v2229_v39 = vpop.eup %2228 }
 0x38b   :  { %v322_v40 = vmul.f32 %v2229_v39, %v2225_v31 }
 0x38d   :  { %2024 = vmatmul.mubr.msk.f32.vlgmr.msra.gmra.mrb[0].mxu0 %vm151_vm2, %v322_v40 }
 0x38e   :  { %v2231_v41 = vpop.eup %2230  ;;  %2032 = vmatpush3.xpose.msk.msra.mxu0 %vm151_vm2, %v480_v35  ;;  %2033 = vmatprep.mubr.msk.f32.mxu0 %vm2343_vm1, %v2342_v9 }
 0x38f   :  { %v324_v42 = vmul.f32 %v2231_v41, %v2227_v33  ;;  %2041 = vmatprep.subr.mxu0 %v2342_v9 }
 0x391   :  { %2029 = vmatmul.mubr.msk.f32.vlgmr.msra.gmra.mrb[6].mxu1 %vm151_vm2, %v324_v42  ;;  %2034 = vmatmul.mubr.msk.f32.vlgmr.msra.gmra.mrb[2].mxu0 %vm151_vm2, %v478_v43 }
 0x392   :  { %2037 = vmatpush3.xpose.msk.msra.mxu1 %vm151_vm2, %v558_v36  ;;  %2038 = vmatprep.mubr.msk.f32.mxu1 %vm2343_vm1, %v2342_v9 }
 0x393   :  { %2046 = vmatprep.subr.mxu1 %v2342_v9  ;;  %2043 = vmatprep.mubr.msk.f32.mxu0 %vm2343_vm1, %v2342_v9 }
 0x395   :  { %2039 = vmatmul.mubr.msk.f32.vlgmr.msra.gmra.mrb[8].mxu1 %vm151_vm2, %v556_v44 }
 0x396   :  { %2048 = vmatprep.mubr.msk.f32.mxu1 %vm2343_vm1, %v2342_v9 }
 0x460   :  { %v2491_v45 = vpop.f32.mrb[0].mxu0 }
 0x461   :  { %v2025_v46 = vpop.f32.mrb[1].mxu0 }
 0x464   :  { %v2493_v47 = vpop.f32.mrb[6].mxu1  ;;  %v551_v48 = vpop.f32.mrb[2].mxu0 }
 0x465   :  { %v2030_v49 = vpop.f32.mrb[7].mxu1  ;;  %v2035_v50 = vpop.f32.mrb[3].mxu0  ;;  %v633_v51 = vsel %vm151_vm2, %v551_v48, -inf }
 0x466   :  { %634 = vmax.xlane.f32.xlu1 %v633_v51 }
 0x468   :  { %v629_v52 = vpop.f32.mrb[8].mxu1 }
 0x469   :  { %v2040_v53 = vpop.f32.mrb[9].mxu1  ;;  %v636_v54 = vsel %vm151_vm2, %v629_v52, -inf }
 0x46a   :  { %637 = vmax.xlane.f32.xlu0 %v636_v54 }
 0x477   :  { %655 = vrot.lane.b32.xlu1 %v2440_v13, %s2348_s17 }
 0x47b   :  { %809 = vrot.lane.b32.xlu1 %v2440_v13, %s2349_s18 }
 0x47f   :  { %887 = vrot.lane.b32.xlu1 %v2445_v14, %s2349_s18 }
 0x480   :  { %731 = vrot.lane.b32.xlu0 %v2445_v14, %s2348_s17 }
 0x484   :  { %807 = vrot.lane.b32.xlu0 %v2440_v13, %s2350_s19 }
 0x4f3   :  { %v635_v55 = vpop.xlane.xlu1 %634 }
 0x4f4   :  { %v639_v56 = vsub.f32 %v551_v48, %v635_v55 }
 0x4f6   :  { %v641_v57 = vmul.f32 1.442695, %v639_v56 }
 0x4f7   :  { %v656_v58 = vpop.permute.xlu1 %655  ;;  %v638_v59 = vpop.xlane.xlu0 %637 }
 0x4f8   :  { %2232 = vpow2.f32 %v641_v57  ;;  %v640_v60 = vsub.f32 %v629_v52, %v638_v59  ;;  %2042 = vmatpush3.msra.mxu0 %v656_v58 }
 0x4f9   :  { %2051 = vmatprep.subr.mxu0 %v2342_v9 }
 0x4fa   :  { %v643_v61 = vmul.f32 1.442695, %v640_v60 }
 0x4fb   :  { %v732_v62 = vpop.permute.xlu0 %731  ;;  %v810_v12 = vpop.permute.xlu1 %809 }
 0x4fc   :  { %2234 = vpow2.f32 %v643_v61  ;;  %2047 = vmatpush3.msra.mxu1 %v732_v62 }
 0x4fd   :  { %2056 = vmatprep.subr.mxu1 %v2342_v9 }
 0x4ff   :  { %v888_v15 = vpop.permute.xlu1 %887  ;;  %v808_v22 = vpop.permute.xlu0 %807 }
 0x502   :  { %v2233_v63 = vpop.eup %2232 }
 0x503   :  { %v645_v4 = vsel %vm151_vm2, %v2233_v63, 0.0 }
 0x504   :  { %646 = vadd.xlane.f32.xlu1 %v645_v4 }
 0x506   :  { %v2235_v7 = vpop.eup %2234 }
 0x507   :  { %v648_v11 = vsel %vm151_vm2, %v2235_v7, 0.0 }
 0x508   :  { %649 = vadd.xlane.f32.xlu1 %v648_v11 }
 0x519   :  { %885 = vrot.lane.b32.xlu1 %v2445_v14, %s2350_s19 }
 0x591   :  { %v647_v16 = vpop.xlane.xlu1 %646 }
 0x592   :  { %2236 = vrcp.f32 %v647_v16 }
 0x595   :  { %v650_v17 = vpop.xlane.xlu1 %649 }
 0x596   :  { %2238 = vrcp.f32 %v650_v17 }
 0x599   :  { %v886_v23 = vpop.permute.xlu1 %885 }
 0x59c   :  { %v2237_v18 = vpop.eup %2236 }
 0x59d   :  { %v652_v19 = vmul.f32 %v2237_v18, %v2233_v63 }
 0x59f   :  { %2044 = vmatmul.mubr.msk.f32.vlgmr.msra.gmra.mrb[4].mxu0 %vm151_vm2, %v652_v19 }
 0x5a0   :  { %v2239_v20 = vpop.eup %2238  ;;  %2052 = vmatpush3.xpose.msk.msra.mxu0 %vm151_vm2, %v810_v12  ;;  %2053 = vmatprep.mubr.msk.f32.mxu0 %vm2343_vm1, %v2342_v9 }
 0x5a1   :  { %v654_v21 = vmul.f32 %v2239_v20, %v2235_v7  ;;  %2061 = vmatprep.subr.mxu0 %v2342_v9 }
 0x5a3   :  { %2049 = vmatmul.mubr.msk.f32.vlgmr.msra.gmra.mrb[10].mxu1 %vm151_vm2, %v654_v21  ;;  %2054 = vmatmul.mubr.msk.f32.vlgmr.msra.gmra.mrb[6].mxu0 %vm151_vm2, %v808_v22 }
 0x5a4   :  { %2057 = vmatpush3.xpose.msk.msra.mxu1 %vm151_vm2, %v888_v15  ;;  %2058 = vmatprep.mubr.msk.f32.mxu1 %vm2343_vm1, %v2342_v9 }
 0x5a5   :  { %2066 = vmatprep.subr.mxu1 %v2342_v9  ;;  %2063 = vmatprep.mubr.msk.f32.mxu0 %vm2343_vm1, %v2342_v9 }
 0x5a7   :  { %2059 = vmatmul.mubr.msk.f32.vlgmr.msra.gmra.mrb[12].mxu1 %vm151_vm2, %v886_v23 }
 0x5a8   :  { %2068 = vmatprep.mubr.msk.f32.mxu1 %vm2343_vm1, %v2342_v9 }
 0x672   :  { %v2523_v24 = vpop.f32.mrb[4].mxu0 }
 0x673   :  { %v2045_v25 = vpop.f32.mrb[5].mxu0 }
 0x676   :  { %v2525_v26 = vpop.f32.mrb[10].mxu1  ;;  %v881_v27 = vpop.f32.mrb[6].mxu0 }
 0x677   :  { %v2050_v28 = vpop.f32.mrb[11].mxu1  ;;  %v2055_v29 = vpop.f32.mrb[7].mxu0  ;;  %v963_v30 = vsel %vm151_vm2, %v881_v27, -inf }
 0x678   :  { %964 = vmax.xlane.f32.xlu0 %v963_v30 }
 0x67a   :  { %v959_v31 = vpop.f32.mrb[12].mxu1 }
 0x67b   :  { %v2060_v32 = vpop.f32.mrb[13].mxu1  ;;  %v966_v33 = vsel %vm151_vm2, %v959_v31, -inf }
 0x67c   :  { %967 = vmax.xlane.f32.xlu1 %v966_v33 }
 0x68d   :  { %985 = vrot.lane.b32.xlu1 %v2440_v13, %s2351_s20 }
 0x68e   :  { %1061 = vrot.lane.b32.xlu0 %v2445_v14, %s2351_s20 }
 0x691   :  { %1139 = vrot.lane.b32.xlu1 %v2440_v13, %s2352_s21 }
 0x695   :  { %1217 = vrot.lane.b32.xlu1 %v2445_v14, %s2352_s21 }
 0x699   :  { %1215 = vrot.lane.b32.xlu1 %v2445_v14, %s2353_s24 }
 0x705   :  { %v965_v34 = vpop.xlane.xlu0 %964 }
 0x706   :  { %v969_v35 = vsub.f32 %v881_v27, %v965_v34 }
 0x708   :  { %v971_v36 = vmul.f32 1.442695, %v969_v35 }
 0x709   :  { %v968_v37 = vpop.xlane.xlu1 %967  ;;  %v1062_v38 = vpop.permute.xlu0 %1061 }
 0x70a   :  { %2240 = vpow2.f32 %v971_v36  ;;  %v970_v39 = vsub.f32 %v959_v31, %v968_v37  ;;  %2067 = vmatpush3.msra.mxu1 %v1062_v38 }
 0x70b   :  { %2076 = vmatprep.subr.mxu1 %v2342_v9 }
 0x70c   :  { %v973_v40 = vmul.f32 1.442695, %v970_v39 }
 0x70d   :  { %v986_v41 = vpop.permute.xlu1 %985 }
 0x70e   :  { %2242 = vpow2.f32 %v973_v40  ;;  %2062 = vmatpush3.msra.mxu0 %v986_v41 }
 0x70f   :  { %2071 = vmatprep.subr.mxu0 %v2342_v9 }
 0x711   :  { %v1140_v50 = vpop.permute.xlu1 %1139 }
 0x714   :  { %v2241_v42 = vpop.eup %2240 }
 0x715   :  { %v975_v43 = vsel %vm151_vm2, %v2241_v42, 0.0  ;;  %v1218_v54 = vpop.permute.xlu1 %1217 }
 0x716   :  { %976 = vadd.xlane.f32.xlu0 %v975_v43 }
 0x718   :  { %v2243_v44 = vpop.eup %2242 }
 0x719   :  { %v978_v46 = vsel %vm151_vm2, %v2243_v44, 0.0  ;;  %v1216_v57 = vpop.permute.xlu1 %1215 }
 0x71a   :  { %979 = vadd.xlane.f32.xlu0 %v978_v46 }
 0x730   :  { %1137 = vrot.lane.b32.xlu0 %v2440_v13, %s2353_s24 }
 0x7a3   :  { %v977_v48 = vpop.xlane.xlu0 %976 }
 0x7a4   :  { %2244 = vrcp.f32 %v977_v48 }
 0x7a7   :  { %v980_v49 = vpop.xlane.xlu0 %979 }
 0x7a8   :  { %2246 = vrcp.f32 %v980_v49 }
 0x7ab   :  { %v1138_v56 = vpop.permute.xlu0 %1137 }
 0x7ae   :  { %v2245_v51 = vpop.eup %2244 }
 0x7af   :  { %v982_v52 = vmul.f32 %v2245_v51, %v2241_v42 }
 0x7b1   :  { %2064 = vmatmul.mubr.msk.f32.vlgmr.msra.gmra.mrb[8].mxu0 %vm151_vm2, %v982_v52 }
 0x7b2   :  { %v2247_v53 = vpop.eup %2246  ;;  %2072 = vmatpush3.xpose.msk.msra.mxu0 %vm151_vm2, %v1140_v50  ;;  %2073 = vmatprep.mubr.msk.f32.mxu0 %vm2343_vm1, %v2342_v9 }
 0x7b3   :  { %v984_v55 = vmul.f32 %v2247_v53, %v2243_v44  ;;  %2081 = vmatprep.subr.mxu0 %v2342_v9 }
 0x7b5   :  { %2069 = vmatmul.mubr.msk.f32.vlgmr.msra.gmra.mrb[14].mxu1 %vm151_vm2, %v984_v55  ;;  %2074 = vmatmul.mubr.msk.f32.vlgmr.msra.gmra.mrb[10].mxu0 %vm151_vm2, %v1138_v56 }
 0x7b6   :  { %2077 = vmatpush3.xpose.msk.msra.mxu1 %vm151_vm2, %v1218_v54  ;;  %2078 = vmatprep.mubr.msk.f32.mxu1 %vm2343_vm1, %v2342_v9 }
 0x7b7   :  { %2086 = vmatprep.subr.mxu1 %v2342_v9  ;;  %2083 = vmatprep.mubr.msk.f32.mxu0 %vm2343_vm1, %v2342_v9 }
 0x7b9   :  { %2079 = vmatmul.mubr.msk.f32.vlgmr.msra.gmra.mrb[16].mxu1 %vm151_vm2, %v1216_v57 }
 0x7ba   :  { %2088 = vmatprep.mubr.msk.f32.mxu1 %vm2343_vm1, %v2342_v9  ;;  %v2199_v9 = vpack.i.bf16 %v2416_v5, %v2410_v2 }
 0x884   :  { %v1057_v58 = vpop.f32.mrb[8].mxu0 }
 0x885   :  { %v2065_v59 = vpop.f32.mrb[9].mxu0 }
 0x888   :  { %v1133_v60 = vpop.f32.mrb[14].mxu1  ;;  %v1211_v61 = vpop.f32.mrb[10].mxu0 }
 0x889   :  { %v2070_v62 = vpop.f32.mrb[15].mxu1  ;;  %v2075_v63 = vpop.f32.mrb[11].mxu0  ;;  %v1293_v4 = vsel %vm151_vm2, %v1211_v61, -inf }
 0x88a   :  { %1294 = vmax.xlane.f32.xlu0 %v1293_v4 }
 0x88c   :  { %v1289_v7 = vpop.f32.mrb[16].mxu1 }
 0x88d   :  { %v2080_v11 = vpop.f32.mrb[17].mxu1  ;;  %v1296_v12 = vsel %vm151_vm2, %v1289_v7, -inf }
 0x88e   :  { %1297 = vmax.xlane.f32.xlu1 %v1296_v12  ;;  %v50_v12 = vld [vmem:[#allocation5 + $0x18] sm:$0xff] }
 0x89f   :  { %1315 = vrot.lane.b32.xlu1 %v2440_v13, %s2354_s25 }
 0x8a3   :  { %2195 = vrot.lane.b32.xlu1 %v2194_v3, %s2355_s26 }
 0x8a7   :  { %2200 = vrot.lane.b32.xlu1 %v2199_v9, %s2355_s26  ;;  %v1934_v9 = vld [vmem:[%s2629_s2 + $0x1] ss:$0 sm:$0xff] }
 0x8ab   :  { %1471 = vrot.lane.b32.xlu1 %v2525_v26, %s2338_s23 }
 0x8af   :  { %1479 = vrot.lane.b32.xlu1 %v1133_v60, %s2341_s9 }
 0x917   :  { %v1295_v15 = vpop.xlane.xlu0 %1294 }
 0x918   :  { %v1299_v16 = vsub.f32 %v1211_v61, %v1295_v15 }
 0x91a   :  { %v1301_v17 = vmul.f32 1.442695, %v1299_v16  ;;  %v51_v16 = vld [vmem:[#allocation5 + $0x28] sm:$0xff] }
 0x91b   :  { %v1298_v13 = vpop.xlane.xlu1 %1297 }
 0x91c   :  { %2248 = vpow2.f32 %v1301_v17  ;;  %v1300_v18 = vsub.f32 %v1289_v7, %v1298_v13  ;;  %v52_v17 = vld [vmem:[#allocation5 + $0x38] sm:$0xff] }
 0x91d   :  { %v2152_v13 = vpack.c.bf16 %v52_v17, %v51_v16 }
 0x91e   :  { %v1303_v19 = vmul.f32 1.442695, %v1300_v18 }
 0x91f   :  { %v1316_v20 = vpop.permute.xlu1 %1315 }
 0x920   :  { %2250 = vpow2.f32 %v1303_v19  ;;  %2082 = vmatpush3.msra.mxu0 %v1316_v20  ;;  %v53_v19 = vld [vmem:[#allocation5 + $0x48] sm:$0xff]  ;;  %v54_v20 = vld [vmem:[#allocation5 + $0x58] sm:$0xff] }
 0x923   :  { %v2196_v0 = vpop.permute.xlu1 %2195 }
 0x924   :  { %v2198_v1 = vunpack.i.h.bf16 %v2196_v0  ;;  %v2197_v2 = vunpack.i.l.bf16 %v2196_v0  ;;  %v2214_v0 = vpack.i.bf16 %v54_v20, %v53_v19 }
 0x926   :  { %v2249_v3 = vpop.eup %2248  ;;  %v2140_v5 = vpack.c.bf16 %v2198_v1, %v2197_v2  ;;  %v2209_v1 = vpack.i.bf16 %v52_v17, %v51_v16  ;;  %v55_v2 = vld [vmem:[#allocation5 + $0x68] sm:$0xff] }
 0x927   :  { %v1305_v21 = vsel %vm151_vm2, %v2249_v3, 0.0  ;;  %v2201_v27 = vpop.permute.xlu1 %2200 }
 0x928   :  { %1306 = vadd.xlane.f32.xlu0 %v1305_v21  ;;  %2141 = vmatprep.subr.bf16.mxu0 %v2140_v5  ;;  %v2203_v28 = vunpack.i.h.bf16 %v2201_v27  ;;  %v2202_v29 = vunpack.i.l.bf16 %v2201_v27 }
 0x92a   :  { %v2251_v22 = vpop.eup %2250  ;;  %v2144_v32 = vpack.c.bf16 %v2203_v28, %v2202_v29 }
 0x92b   :  { %v1308_v23 = vsel %vm151_vm2, %v2251_v22, 0.0  ;;  %v1472_v39 = vpop.permute.xlu1 %1471 }
 0x92c   :  { %1309 = vadd.xlane.f32.xlu0 %v1308_v23  ;;  %v1492_v48 = vsel %vm151_vm2, %v2493_v47, %v1472_v39 }
 0x92f   :  { %v1480_v42 = vpop.permute.xlu1 %1479 }
 0x930   :  { %v1495_v49 = vsel %vm1493_vm4, %v1492_v48, %v1480_v42 }
 0x942   :  { %1391 = vrot.lane.b32.xlu0 %v2445_v14, %s2354_s25 }
 0x946   :  { %1469 = vrot.lane.b32.xlu0 %v2523_v24, %s2338_s23 }
 0x94a   :  { %1477 = vrot.lane.b32.xlu0 %v1057_v58, %s2341_s9 }
 0x9b5   :  { %v1307_v25 = vpop.xlane.xlu0 %1306 }
 0x9b6   :  { %2252 = vrcp.f32 %v1307_v25 }
 0x9b9   :  { %v1310_v26 = vpop.xlane.xlu0 %1309 }
 0x9ba   :  { %2254 = vrcp.f32 %v1310_v26 }
 0x9bd   :  { %v1392_v30 = vpop.permute.xlu0 %1391 }
 0x9be   :  { %2087 = vmatpush3.msra.mxu1 %v1392_v30 }
 0x9c0   :  { %v2253_v31 = vpop.eup %2252 }
 0x9c1   :  { %v1312_v33 = vmul.f32 %v2253_v31, %v2249_v3  ;;  %v1470_v38 = vpop.permute.xlu0 %1469  ;;  %v56_v3 = vld [vmem:[#allocation5 + $0x78] sm:$0xff] }
 0x9c2   :  { %v1491_v41 = vsel %vm151_vm2, %v2491_v45, %v1470_v38 }
 0x9c3   :  { %2084 = vmatmul.mubr.msk.f32.vlgmr.msra.gmra.mrb[12].mxu0 %vm151_vm2, %v1312_v33 }
 0x9c4   :  { %v2255_v14 = vpop.eup %2254  ;;  %2143 = vmatpush3.bf16.msra.mxu0 %v2140_v5  ;;  %v2219_v5 = vpack.i.bf16 %v56_v3, %v55_v2 }
 0x9c5   :  { %v1314_v34 = vmul.f32 %v2255_v14, %v2251_v22  ;;  %2145 = vmatprep.subr.bf16.mxu0 %v2144_v32  ;;  %v1478_v40 = vpop.permute.xlu0 %1477 }
 0x9c6   :  { %v1494_v43 = vsel %vm1493_vm4, %v1491_v41, %v1478_v40 }
 0x9c7   :  { %2089 = vmatmul.mubr.msk.f32.vlgmr.msra.gmra.mrb[18].mxu1 %vm151_vm2, %v1314_v34 }
 0x9c8   :  { %2147 = vmatpush3.bf16.msra.mxu0 %v2144_v32 }
 0xa96   :  { %v1387_v24 = vpop.f32.mrb[12].mxu0 }
 0xa97   :  { %1485 = vrot.lane.b32.xlu0 %v1387_v24, %s2356_s27  ;;  %v2085_v35 = vpop.f32.mrb[13].mxu0 }
 0xa9a   :  { %v1463_v36 = vpop.f32.mrb[18].mxu1 }
 0xa9b   :  { %1487 = vrot.lane.b32.xlu1 %v1463_v36, %s2356_s27  ;;  %v2090_v37 = vpop.f32.mrb[19].mxu1  ;;  %1515 = vrot.lane.b32.xlu0 %v2437_v10, %s2355_s26 }
 0xb09   :  { %v1486_v44 = vpop.permute.xlu0 %1485 }
 0xb0a   :  { %v1497_v46 = vsel %vm1496_vm3, %v1494_v43, %v1486_v44 }
 0xb0b   :  { %2099 = vmatprep.mubr.msk.f32.mxu0 %vm66_vm0, %v1497_v46 }
 0xb0d   :  { %v1488_v50 = vpop.permute.xlu1 %1487  ;;  %v1516_v51 = vpop.permute.xlu0 %1515 }
 0xb0e   :  { %v1498_v10 = vsel %vm1496_vm3, %v1495_v49, %v1488_v50 }
 0xb0f   :  { %2100 = vmatmul.mubr.msk.f32.vlgmr.msra.gmra.mrb[14].mxu0 %vm66_vm0, %v1498_v10 }
 0xbe2   :  { %v2101_v52 = vpop.f32.mrb[14].mxu0 }
 0xbe3   :  { %v1596_v53 = vadd.f32 %v2101_v52, %v1516_v51  ;;  %v1590_v54 = vpop.f32.mrb[15].mxu0 }
 0xbe4   :  { %v1591_v55 = vadd.f32 %v1590_v54, %v1516_v51 }
 0xbe5   :  { %v1600_v45 = vadd.f32 %v1596_v53, %v2424_v8 }
 0xbe6   :  { %v1599_v56 = vadd.f32 %v1591_v55, %v2418_v6  ;;  %v49_v6 = vld [vmem:[#allocation5 + $0x8] sm:$0xff] }
 0xbe7   :  { %v1604_v57 = vsel %vm66_vm0, %v1600_v45, 0.0  ;;  %v2148_v15 = vpack.c.bf16 %v50_v12, %v49_v6  ;;  %v2204_v18 = vpack.i.bf16 %v50_v12, %v49_v6 }
 0xbe8   :  { %1605 = vadd.xlane.f32.xlu0 %v1604_v57  ;;  %v1601_v58 = vsel %vm66_vm0, %v1599_v56, 0.0 }
 0xbe9   :  { %1602 = vadd.xlane.f32.xlu1 %v1601_v58  ;;  %2149 = vmatprep.subr.bf16.mxu1 %v2148_v15  ;;  %v1937_v58 = vld [vmem:[%s2629_s2 + $0x2] ss:$0 sm:$0xff]  ;;  %s2357_s2 = smov [#allocation7]  }
 0xbea   :  { %2151 = vmatpush3.bf16.msra.mxu1 %v2148_v15  ;;  %s1892_s5 = sshll.u32 %s2357_s2, 4  ;;  %s1893_s5 = int_to_ptr.vmem [resolvable:$true] %s1892_s5 }
 0xbeb   :  { %2153 = vmatprep.subr.bf16.mxu1 %v2152_v13  ;;  %s2308_s6 = scalar_lea.vmem %s1893_s5, 256  ;;  %p2313_p3 = scmp.lt.s32.totalorder %s1893_s5, %s1893_s5 }
 0xbec   :  { %p2309_p2 = scmp.ne.s32.totalorder %s1893_s5, %s2308_s6  ;;  %p2314_p4 = scmp.lt.s32.totalorder %s2308_s6, %s2308_s6 }
 0xbee   :  { %2155 = vmatpush3.bf16.msra.mxu1 %v2152_v13  ;;  %p2315_p5 = por %p2314_p4, %p2313_p3 }
 0xbf0   :  { %p2316_p6 = pnand %p2315_p5, %p2309_p2 }
 0xc75   :  { %v1606_v47 = vpop.xlane.xlu0 %1605 }
 0xc76   :  { %v1609_v59 = vmul.f32 0.03125, %v1606_v47  ;;  %v1603_v60 = vpop.xlane.xlu1 %1602 }
 0xc77   :  { %v1608_v61 = vmul.f32 0.03125, %v1603_v60 }
 0xc78   :  { %v1611_v62 = vsub.f32 %v1600_v45, %v1609_v59 }
 0xc79   :  { %v1610_v63 = vsub.f32 %v1599_v56, %v1608_v61 }
 0xc7a   :  { %v1613_v4 = vmul.f32 %v1611_v62, %v1611_v62 }
 0xc7b   :  { %v1612_v7 = vmul.f32 %v1610_v63, %v1610_v63 }
 0xc7c   :  { %v1617_v11 = vsel %vm66_vm0, %v1613_v4, 0.0 }
 0xc7d   :  { %1618 = vadd.xlane.f32.xlu1 %v1617_v11  ;;  %v1614_v8 = vsel %vm66_vm0, %v1612_v7, 0.0 }
 0xc7e   :  { %1615 = vadd.xlane.f32.xlu0 %v1614_v8 }
 0xc8e   :  { %2205 = vrot.lane.b32.xlu1 %v2204_v18, %s2345_s14 }
 0xc92   :  { %2210 = vrot.lane.b32.xlu1 %v2209_v1, %s2345_s14 }
 0xc94   :  { %1636 = vrot.lane.b32.xlu0 %v1934_v9, %s2344_s13 }
 0xc96   :  { %2220 = vrot.lane.b32.xlu1 %v2219_v5, %s2345_s14 }
 0xc98   :  { %2215 = vrot.lane.b32.xlu0 %v2214_v0, %s2345_s14 }
 0xc9c   :  { %1641 = vrot.lane.b32.xlu0 %v1934_v9, %s2345_s14 }
 0xd0a   :  { %v1619_v21 = vpop.xlane.xlu1 %1618 }
 0xd0b   :  { %v1621_v22 = vmul.f32 0.03125, %v1619_v21  ;;  %v1616_v23 = vpop.xlane.xlu0 %1615 }
 0xd0c   :  { %v1620_v25 = vmul.f32 0.03125, %v1616_v23 }
 0xd0d   :  { %v1623_v26 = vadd.f32 1e-05, %v1621_v22 }
 0xd0e   :  { %v1622_v27 = vadd.f32 1e-05, %v1620_v25  ;;  %v2206_v29 = vpop.permute.xlu1 %2205 }
 0xd0f   :  { %2256 = vrsqrt.f32 %v1623_v26  ;;  %v1637_v28 = vpop.permute.xlu0 %1636  ;;  %v2208_v30 = vunpack.i.h.bf16 %v2206_v29  ;;  %v2207_v31 = vunpack.i.l.bf16 %v2206_v29 }
 0xd10   :  { %2258 = vrsqrt.f32 %v1622_v27 }
 0xd11   :  { %v2156_v14 = vpack.c.bf16 %v2208_v30, %v2207_v31 }
 0xd12   :  { %v2211_v37 = vpop.permute.xlu1 %2210 }
 0xd13   :  { %v2216_v32 = vpop.permute.xlu0 %2215  ;;  %v2213_v39 = vunpack.i.h.bf16 %v2211_v37  ;;  %v2212_v40 = vunpack.i.l.bf16 %v2211_v37  ;;  %2157 = vmatprep.subr.bf16.mxu0 %v2156_v14 }
 0xd14   :  { %v2218_v34 = vunpack.i.h.bf16 %v2216_v32  ;;  %v2217_v24 = vunpack.i.l.bf16 %v2216_v32  ;;  %2159 = vmatpush3.bf16.msra.mxu0 %v2156_v14 }
 0xd15   :  { %v2160_v43 = vpack.c.bf16 %v2213_v39, %v2212_v40 }
 0xd16   :  { %v2164_v44 = vpack.c.bf16 %v2218_v34, %v2217_v24  ;;  %v2221_v46 = vpop.permute.xlu1 %2220 }
 0xd17   :  { %2161 = vmatprep.subr.bf16.mxu0 %v2160_v43  ;;  %v2223_v49 = vunpack.i.h.bf16 %v2221_v46  ;;  %v2222_v50 = vunpack.i.l.bf16 %v2221_v46  ;;  %v1642_v52 = vpop.permute.xlu0 %1641 }
 0xd18   :  { %2163 = vmatpush3.bf16.msra.mxu0 %v2160_v43 }
 0xd19   :  { %v2257_v33 = vpop.eup %2256  ;;  %v2168_v51 = vpack.c.bf16 %v2223_v49, %v2222_v50  ;;  %2165 = vmatprep.subr.bf16.mxu0 %v2164_v44 }
 0xd1a   :  { %v2259_v35 = vpop.eup %2258  ;;  %v1627_v36 = vmul.f32 %v2257_v33, %v1611_v62 }
 0xd1b   :  { %v1626_v38 = vmul.f32 %v2259_v35, %v1610_v63 }
 0xd1c   :  { %v1635_v41 = vmul.f32 %v1934_v9, %v1627_v36  ;;  %2167 = vmatpush3.bf16.msra.mxu0 %v2164_v44 }
 0xd1d   :  { %v1634_v42 = vmul.f32 %v1934_v9, %v1626_v38  ;;  %2169 = vmatprep.subr.bf16.mxu0 %v2168_v51 }
 0xd1e   :  { %v1640_v10 = vadd.f32 %v1637_v28, %v1635_v41 }
 0xd1f   :  { %v1639_v48 = vadd.f32 %v1637_v28, %v1634_v42 }
 0xd20   :  { %2171 = vmatpush3.bf16.msra.mxu0 %v2168_v51 }
 0xd21   :  { %2110 = vmatprep.mubr.msk.f32.mxu1 %vm66_vm0, %v1639_v48 }
 0xd22   :  { %2111 = vmatmul.mubr.msk.f32.vlgmr.msra.gmra.mrb[20].mxu1 %vm66_vm0, %v1640_v10 }
 0xdf5   :  { %v2112_v53 = vpop.f32.mrb[20].mxu1 }
 0xdf6   :  { %v1722_v54 = vadd.f32 %v2112_v53, %v1642_v52  ;;  %v1716_v55 = vpop.f32.mrb[21].mxu1 }
 0xdf7   :  { %v1717_v45 = vadd.f32 %v1716_v55, %v1642_v52 }
 0xdf8   :  { %v1726_v57 = vmax.f32 %v1722_v54, 0.0 }
 0xdf9   :  { %v1725_v56 = vmax.f32 %v1717_v45, 0.0 }
 0xdfb   :  { %2129 = vmatprep.mubr.msk.f32.mxu0 %vm1765_vm5, %v1725_v56 }
 0xdfc   :  { %2130 = vmatmul.mubr.msk.f32.vlgmr.msra.gmra.mrb[16].mxu0 %vm1765_vm5, %v1726_v57 }
 0xecf   :  { %v2131_v47 = vpop.f32.mrb[16].mxu0 }
 0xed0   :  { %v1844_v59 = vadd.f32 %v2131_v47, %v1937_v58  ;;  %v1838_v60 = vpop.f32.mrb[17].mxu0 }
 0xed1   :  { %v1839_v61 = vadd.f32 %v1937_v58, %v1838_v60 }
 0xed2   :  { %v1848_v62 = vadd.f32 %v1844_v59, %v1640_v10 }
 0xed3   :  { %v1847_v63 = vadd.f32 %v1839_v61, %v1639_v48 }
 0xed4   :  { %v1852_v4 = vsel %vm66_vm0, %v1848_v62, 0.0 }
 0xed5   :  { %1853 = vadd.xlane.f32.xlu0 %v1852_v4  ;;  %v1849_v7 = vsel %vm66_vm0, %v1847_v63, 0.0 }
 0xed6   :  { %1850 = vadd.xlane.f32.xlu1 %v1849_v7 }
 0xf62   :  { %v1854_v11 = vpop.xlane.xlu0 %1853 }
 0xf63   :  { %v1856_v8 = vmul.f32 0.03125, %v1854_v11  ;;  %v1851_v6 = vpop.xlane.xlu1 %1850 }
 0xf64   :  { %v1855_v12 = vmul.f32 0.03125, %v1851_v6 }
 0xf65   :  { %v1858_v9 = vsub.f32 %v1848_v62, %v1856_v8 }
 0xf66   :  { %v1857_v15 = vsub.f32 %v1847_v63, %v1855_v12 }
 0xf67   :  { %v1860_v16 = vmul.f32 %v1858_v9, %v1858_v9 }
 0xf68   :  { %v1859_v17 = vmul.f32 %v1857_v15, %v1857_v15 }
 0xf69   :  { %v1864_v13 = vsel %vm66_vm0, %v1860_v16, 0.0 }
 0xf6a   :  { %1865 = vadd.xlane.f32.xlu1 %v1864_v13  ;;  %v1861_v18 = vsel %vm66_vm0, %v1859_v17, 0.0 }
 0xf6b   :  { %1862 = vadd.xlane.f32.xlu0 %v1861_v18 }
 0xf7b   :  { %1880 = vrot.lane.b32.xlu1 %v1937_v58, %s2345_s14 }
 0xf81   :  { %1875 = vrot.lane.b32.xlu0 %v1937_v58, %s2344_s13 }
 0xff7   :  { %v1866_v19 = vpop.xlane.xlu1 %1865 }
 0xff8   :  { %v1868_v20 = vmul.f32 0.03125, %v1866_v19  ;;  %v1863_v0 = vpop.xlane.xlu0 %1862 }
 0xff9   :  { %v1867_v1 = vmul.f32 0.03125, %v1863_v0 }
 0xffa   :  { %v1870_v2 = vadd.f32 1e-05, %v1868_v20 }
 0xffb   :  { %v1869_v3 = vadd.f32 1e-05, %v1867_v1  ;;  %v1881_v26 = vpop.permute.xlu1 %1880 }
 0xffc   :  { %2260 = vrsqrt.f32 %v1870_v2  ;;  %v1876_v21 = vpop.permute.xlu0 %1875 }
 0xffd   :  { %2262 = vrsqrt.f32 %v1869_v3 }
0x1006   :  { %v2261_v5 = vpop.eup %2260 }
0x1007   :  { %v2263_v22 = vpop.eup %2262  ;;  %v1874_v23 = vmul.f32 %v2261_v5, %v1858_v9 }
0x1008   :  { %v1873_v25 = vmul.f32 %v2263_v22, %v1857_v15 }
0x1009   :  { %v1879_v27 = vmul.f32 %v1876_v21, %v1874_v23 }
0x100a   :  { %v1878_v28 = vmul.f32 %v1876_v21, %v1873_v25 }
0x100b   :  { %v1884_v29 = vadd.f32 %v1881_v26, %v1879_v27 }
0x100c   :  { %v1883_v30 = vadd.f32 %v1881_v26, %v1878_v28 }
0x100d   :  { %1886 = vst.msk [vmem:[#allocation7 + $0x8] sm:$0xff] %vm66_vm0, %v1884_v29 }
0x100e   :  { %1885 = vst.msk [vmem:[#allocation7] sm:$0xff] %vm66_vm0, %v1883_v30 }
0x100f   :  { %2319 = shalt.err (!%p2316_p6)
}
0x1010   :  { %s2320_s0 = scalar_lea.hbm %s2630_s3, 256 }
0x1011   :  { %p2321_p7 = scmp.ne.s32.totalorder %s2630_s3, %s2320_s0  ;;  %p2324_p8 = scmp.lt.u32.totalorder %s2320_s0, %s2630_s3 }
0x1013   :  { %p2326_p9 = pnand %p2324_p8, %p2321_p7 }
0x1015   :  { %2329 = shalt.err (!%p2326_p9)
}
0x1016   :  { %1898 = dma.vmem_to_hbm [thread:$0]  %s1893_s5, 256, %s2630_s3, [#allocation4], %s2337_s22, %s2337_s22, %s2338_s23  }
0x1017   :  { %2334 = dma.done.wait [#allocation4], 256  }
0x1018   :  { %2335 = vsyncadd [#allocation4], 4294967040 }
0x1019   :  { %1902 = vsyncpa [#allocation3], 1 }
0x101a   :  { %1903 = vsyncpa [#allocation6], 1 }
0x101b   :  { %1904 = vsyncpa [#allocation4], 1 }

</bundles_post_ra>
